<compile_context>
chip_gen: v5e
topology: v5e:2x2
jax: 0.10.0
libtpu: 0.0.40
codegen_flags: <defaults>
</compile_context>

<pallas_src>
import functools

import jax
import jax.numpy as jnp
import numpy as np
from jax.experimental import pallas as pl
from jax.experimental.pallas import tpu as pltpu

_LANES = 128


def _dice_partial_kernel(score_ref, tgt_ref, out_ref,
                         inter_acc, y_acc, z_acc, *,
                         softmax, row_mask, col_mask, n_rows):
    """Accumulates per-class partial sums for one batch element.

    Block shapes (batch dim squeezed away):
      score_ref : (C, TR, 128)  predictions, native dtype
      tgt_ref   : (TR, 128)     integer labels
      out_ref   : (C, 3)        [intersect, y_sum, z_sum] per class, written
                                on the last row-tile step only
      *_acc     : (C, TR, 128)  f32 VMEM accumulators (VPU adds in the hot
                                loop, single reduction at finalize)
    """
    r = pl.program_id(1)

    @pl.when(r == 0)
    def _init():
        inter_acc[...] = jnp.zeros_like(inter_acc)
        y_acc[...] = jnp.zeros_like(y_acc)
        z_acc[...] = jnp.zeros_like(z_acc)

    score = score_ref[...].astype(jnp.float32)          # (C, TR, L)
    tgt = tgt_ref[...].astype(jnp.int32)                # (TR, L)
    _, tr, lanes = score.shape

    # Ragged last row-tile: rows >= n_rows hold garbage -> mask them out.
    rvalid = None
    if row_mask:
        row_ids = jax.lax.broadcasted_iota(jnp.int32, (tr, lanes), 0)
        rvalid = (r * tr + row_ids) < n_rows
        tgt = jnp.where(rvalid, tgt, -1)

    if softmax:
        # Channel softmax: axis 0 is a leading dim -> pure VPU max/sum across
        # the C slabs; one reciprocal of the shared denominator + C multiplies
        # instead of C per-pixel divides.
        m = jnp.max(score, axis=0, keepdims=True)
        e = jnp.exp(score - m)
        inv_denom = 1.0 / jnp.sum(e, axis=0, keepdims=True)
        score = e * inv_denom

    # Mask invalid pixels out of the score stream. Only emitted when needed:
    # lane-padded columns resurrect to 1/C under softmax; ragged rows are
    # garbage for both paths.  For aligned inputs no mask code is generated.
    mask = rvalid
    if col_mask:
        cvalid = tgt >= 0
        mask = cvalid if mask is None else (mask & cvalid)
    if mask is not None:
        score = jnp.where(mask[None, :, :], score, 0.0)

    class_ids = jax.lax.broadcasted_iota(jnp.int32, score.shape, 0)
    onehot = (tgt[None, :, :] == class_ids).astype(jnp.float32)

    inter_acc[...] += score * onehot
    y_acc[...] += onehot                                 # t*t == t for one-hot
    z_acc[...] += score * score

    @pl.when(r == pl.num_programs(1) - 1)
    def _finalize():
        def reduce_to_col(acc):
            s = jnp.sum(acc[...], axis=1)                # (C, L)
            return jnp.sum(s, axis=1, keepdims=True)     # (C, 1)
        out_ref[:, 0:1] = reduce_to_col(inter_acc)
        out_ref[:, 1:2] = reduce_to_col(y_acc)
        out_ref[:, 2:3] = reduce_to_col(z_acc)


def _pick_tile_rows(n_rows, n_classes, in_bytes, tgt_bytes, vmem_budget_bytes):
    """Rows (of 128 pixels) per block, sized against a per-core VMEM budget."""
    per_row = _LANES * (2 * n_classes * in_bytes     # double-buffered score
                        + 2 * tgt_bytes              # double-buffered labels
                        + 3 * n_classes * 4)         # f32 accumulators
    tile = int(vmem_budget_bytes // per_row)
    tile = max(8, (tile // 8) * 8)
    tile = min(tile, 2048)
    if n_rows <= tile:
        return n_rows                                # full extent, no raggedness
    return tile


def dice_loss(inputs, target, weight=None, softmax=False,
              vmem_budget_bytes=8 * 1024 * 1024):
    """Pallas TPU equivalent of DiceLoss.forward.

    inputs: (N, C, H, W) float predictions (native dtype, e.g. bf16 or f32).
    target: (N, H, W) integer class labels in [0, C).
    Returns a scalar float32 loss.
    """
    N, C, H, W = inputs.shape
    assert target.shape == (N, H, W), (inputs.shape, target.shape)
    HW = H * W

    if not jnp.issubdtype(inputs.dtype, jnp.floating):
        inputs = inputs.astype(jnp.float32)
    # Labels pass through in their incoming signed-int dtype (feed int8/int16
    # labels upstream to shrink the label stream further).
    if not jnp.issubdtype(target.dtype, jnp.signedinteger):
        target = target.astype(jnp.int32)

    # View predictions as (N, C, R, 128): free reshape when H*W % 128 == 0
    # (the common case).  Otherwise pad the flattened pixel axis once.
    col_pad = (-HW) % _LANES
    R = (HW + col_pad) // _LANES
    if col_pad:
        # TODO(synk): rare path (H*W not a multiple of 128) costs one copy.
        score = jnp.pad(inputs.reshape(N, C, HW), ((0, 0), (0, 0), (0, col_pad)))
        tgt = jnp.pad(target.reshape(N, HW), ((0, 0), (0, col_pad)),
                      constant_values=-1)
    else:
        score = inputs
        tgt = target
    score = score.reshape(N, C, R, _LANES)
    tgt = tgt.reshape(N, R, _LANES)

    in_bytes = jnp.dtype(score.dtype).itemsize
    tgt_bytes = jnp.dtype(tgt.dtype).itemsize
    tile_r = _pick_tile_rows(R, C, in_bytes, tgt_bytes, vmem_budget_bytes)
    grid_r = pl.cdiv(R, tile_r)
    row_mask = (R % tile_r) != 0

    kernel = functools.partial(
        _dice_partial_kernel,
        softmax=bool(softmax),
        row_mask=row_mask,
        col_mask=bool(softmax) and col_pad > 0,
        n_rows=R,
    )

    partials = pl.pallas_call(
        kernel,
        out_shape=jax.ShapeDtypeStruct((N, C, 3), jnp.float32),
        grid_spec=pltpu.PrefetchScalarGridSpec(
            num_scalar_prefetch=0,
            grid=(N, grid_r),
            in_specs=[
                pl.BlockSpec((None, C, tile_r, _LANES),
                             lambda n, r: (n, 0, r, 0)),     # predictions
                pl.BlockSpec((None, tile_r, _LANES),
                             lambda n, r: (n, r, 0)),        # labels
            ],
            out_specs=pl.BlockSpec((None, C, 3), lambda n, r: (n, 0, 0)),
            scratch_shapes=[
                pltpu.VMEM((C, tile_r, _LANES), jnp.float32),  # intersect
                pltpu.VMEM((C, tile_r, _LANES), jnp.float32),  # y_sum
                pltpu.VMEM((C, tile_r, _LANES), jnp.float32),  # z_sum
            ],
        ),
        compiler_params=pltpu.CompilerParams(
            dimension_semantics=("parallel", "arbitrary")),
    )(score, tgt)

    # Tiny epilogue in plain JAX: combine per-batch partials, apply the dice
    # formula and the class weights (keeping this outside the kernel is what
    # lets the batch axis run "parallel" across both v7x TensorCores).
    sums = jnp.sum(partials, axis=0)                          # (C, 3)
    intersect, y_sum, z_sum = sums[:, 0], sums[:, 1], sums[:, 2]
    smooth = 1e-05
    dice = 1.0 - (2.0 * intersect + smooth) / (z_sum + y_sum + smooth)
    if weight is None:
        weight = [1.0] * C
    w = jnp.asarray(weight, dtype=jnp.float32)
    return jnp.sum(dice * w) / C


def dice_loss_ref(inputs, target, weight=None, softmax=False):
    """Pure-JAX reference mirroring the PyTorch module."""
    inputs = inputs.astype(jnp.float32)
    C = inputs.shape[1]
    if softmax:
        inputs = jax.nn.softmax(inputs, axis=1)
    onehot = (target[:, None, :, :] ==
              jnp.arange(C, dtype=target.dtype)[None, :, None, None]
              ).astype(jnp.float32)
    if weight is None:
        weight = [1.0] * C
    smooth = 1e-05
    loss = 0.0
    for i in range(C):
        s = inputs[:, i]
        t = onehot[:, i]
        intersect = jnp.sum(s * t)
        y_sum = jnp.sum(t * t)
        z_sum = jnp.sum(s * s)
        dice = 1.0 - (2.0 * intersect + smooth) / (z_sum + y_sum + smooth)
        loss = loss + dice * weight[i]
    return loss / C


if __name__ == "__main__":
    key = jax.random.PRNGKey(0)
    k1, k2 = jax.random.split(key)

    N, C, H, W = 2, 4, 16, 16
    inputs = jax.random.normal(k1, (N, C, H, W), dtype=jnp.float32)
    target = jax.random.randint(k2, (N, H, W), 0, C, dtype=jnp.int32)
    weight = [1.0, 2.0, 0.5, 1.5]

    # f32 predictions, both softmax paths.
    out_sm = jax.block_until_ready(
        dice_loss(inputs, target, weight=weight, softmax=True))
    out_raw = jax.block_until_ready(dice_loss(inputs, target, softmax=False))
    ref_sm = dice_loss_ref(inputs, target, weight=weight, softmax=True)
    ref_raw = dice_loss_ref(inputs, target, softmax=False)
    assert np.allclose(np.asarray(out_sm), np.asarray(ref_sm),
                       rtol=1e-5, atol=1e-6), (out_sm, ref_sm)
    assert np.allclose(np.asarray(out_raw), np.asarray(ref_raw),
                       rtol=1e-5, atol=1e-6), (out_raw, ref_raw)

    # bf16 predictions (native-dtype path: halves HBM bytes of the dominant
    # input stream).  Compare against an f32 reference on the same
    # bf16-rounded values.
    k3, k4 = jax.random.split(k2)
    H2 = W2 = 32
    inputs_bf = jax.random.normal(k3, (N, C, H2, W2),
                                  dtype=jnp.float32).astype(jnp.bfloat16)
    target2 = jax.random.randint(k4, (N, H2, W2), 0, C, dtype=jnp.int32)
    out_bf = jax.block_until_ready(
        dice_loss(inputs_bf, target2, weight=weight, softmax=True))
    ref_bf = dice_loss_ref(inputs_bf.astype(jnp.float32), target2,
                           weight=weight, softmax=True)
    assert np.allclose(np.asarray(out_bf), np.asarray(ref_bf),
                       rtol=1e-4, atol=1e-5), (out_bf, ref_bf)

    print("KERNEL_OK")
</pallas_src>

<mosaic_0001>
module attributes {stable_mosaic.version = 11 : i64} {
  func.func @_dice_partial_kernel(%arg0: i32, %arg1: i32, %arg2: memref<1x4x2x128xf32, #tpu.memory_space<vmem>>, %arg3: memref<1x2x128xi32, #tpu.memory_space<vmem>>, %arg4: memref<1x4x3xf32, #tpu.memory_space<vmem>>, %arg5: memref<4x2x128xf32, #tpu.memory_space<vmem>>, %arg6: memref<4x2x128xf32, #tpu.memory_space<vmem>>, %arg7: memref<4x2x128xf32, #tpu.memory_space<vmem>>) attributes {dimension_semantics = [#tpu.dimension_semantics<parallel>, #tpu.dimension_semantics<arbitrary>], iteration_bounds = array<i64: 2, 1>, scalar_prefetch = 0 : i64, scratch_operands = 3 : i64, tpu.core_type = #tpu.core_type<tc>, window_params = [{transform_indices = @transform_0, window_bounds = array<i64: 1, 4, 2, 128>}, {transform_indices = @transform_1, window_bounds = array<i64: 1, 2, 128>}, {transform_indices = @transform_2, window_bounds = array<i64: 1, 4, 3>}]} {
    %c0_i32 = arith.constant 0 : i32
    %0 = arith.cmpi eq, %arg1, %c0_i32 : i32
    %1 = arith.extui %0 : i1 to i32
    %c0_i32_0 = arith.constant 0 : i32
    %2 = arith.cmpi ne, %1, %c0_i32_0 : i32
    scf.if %2 {
      %cst_29 = arith.constant 0.000000e+00 : f32
      %38 = vector.broadcast %cst_29 : f32 to vector<4x2x128xf32>
      %c0_30 = arith.constant 0 : index
      %c0_31 = arith.constant 0 : index
      %c0_32 = arith.constant 0 : index
      %39 = vector.load %arg5[%c0_30, %c0_31, %c0_32] : memref<4x2x128xf32, #tpu.memory_space<vmem>>, vector<4x2x128xf32>
      tpu.vector_store %arg5[%c0_30, %c0_31, %c0_32], %38 {strides = array<i32>} : memref<4x2x128xf32, #tpu.memory_space<vmem>>, vector<4x2x128xf32>,
      %cst_33 = arith.constant 0.000000e+00 : f32
      %40 = vector.broadcast %cst_33 : f32 to vector<4x2x128xf32>
      %c0_34 = arith.constant 0 : index
      %c0_35 = arith.constant 0 : index
      %c0_36 = arith.constant 0 : index
      %41 = vector.load %arg6[%c0_34, %c0_35, %c0_36] : memref<4x2x128xf32, #tpu.memory_space<vmem>>, vector<4x2x128xf32>
      tpu.vector_store %arg6[%c0_34, %c0_35, %c0_36], %40 {strides = array<i32>} : memref<4x2x128xf32, #tpu.memory_space<vmem>>, vector<4x2x128xf32>,
      %cst_37 = arith.constant 0.000000e+00 : f32
      %42 = vector.broadcast %cst_37 : f32 to vector<4x2x128xf32>
      %c0_38 = arith.constant 0 : index
      %c0_39 = arith.constant 0 : index
      %c0_40 = arith.constant 0 : index
      %43 = vector.load %arg7[%c0_38, %c0_39, %c0_40] : memref<4x2x128xf32, #tpu.memory_space<vmem>>, vector<4x2x128xf32>
      tpu.vector_store %arg7[%c0_38, %c0_39, %c0_40], %42 {strides = array<i32>} : memref<4x2x128xf32, #tpu.memory_space<vmem>>, vector<4x2x128xf32>,
    } else {
    }
    %c0 = arith.constant 0 : index
    %c0_1 = arith.constant 0 : index
    %c0_2 = arith.constant 0 : index
    %c0_3 = arith.constant 0 : index
    %3 = vector.load %arg2[%c0, %c0_1, %c0_2, %c0_3] : memref<1x4x2x128xf32, #tpu.memory_space<vmem>>, vector<1x4x2x128xf32>
    %4 = vector.shape_cast %3 : vector<1x4x2x128xf32> to vector<4x2x128xf32>
    %c0_4 = arith.constant 0 : index
    %c0_5 = arith.constant 0 : index
    %c0_6 = arith.constant 0 : index
    %5 = vector.load %arg3[%c0_4, %c0_5, %c0_6] : memref<1x2x128xi32, #tpu.memory_space<vmem>>, vector<1x2x128xi32>
    %6 = vector.shape_cast %5 : vector<1x2x128xi32> to vector<2x128xi32>
    %cst = arith.constant dense<0xFF800000> : vector<2x128xf32>
    %7 = vector.multi_reduction <maximumf>, %4, %cst [0] : vector<4x2x128xf32> to vector<2x128xf32>
    %8 = vector.shape_cast %7 : vector<2x128xf32> to vector<1x2x128xf32>
    %9 = vector.broadcast %8 : vector<1x2x128xf32> to vector<4x2x128xf32>
    %10 = arith.subf %4, %9 : vector<4x2x128xf32>
    %11 = math.exp %10 : vector<4x2x128xf32>
    %cst_7 = arith.constant dense<0.000000e+00> : vector<2x128xf32>
    %12 = vector.multi_reduction <add>, %11, %cst_7 [0] : vector<4x2x128xf32> to vector<2x128xf32>
    %13 = vector.shape_cast %12 : vector<2x128xf32> to vector<1x2x128xf32>
    %cst_8 = arith.constant 1.000000e+00 : f32
    %14 = vector.broadcast %cst_8 : f32 to vector<1x2x128xf32>
    %15 = arith.divf %14, %13 : vector<1x2x128xf32>
    %16 = vector.broadcast %15 : vector<1x2x128xf32> to vector<4x2x128xf32>
    %17 = arith.mulf %11, %16 : vector<4x2x128xf32>
    %18 = tpu.iota {dimensions = array<i32: 0>} : vector<4x2x128xi32>
    %19 = vector.shape_cast %6 : vector<2x128xi32> to vector<1x2x128xi32>
    %20 = vector.broadcast %19 : vector<1x2x128xi32> to vector<4x2x128xi32>
    %21 = arith.cmpi eq, %20, %18 : vector<4x2x128xi32>
    %22 = arith.extui %21 : vector<4x2x128xi1> to vector<4x2x128xi32>
    %23 = arith.sitofp %22 : vector<4x2x128xi32> to vector<4x2x128xf32>
    %c0_9 = arith.constant 0 : index
    %c0_10 = arith.constant 0 : index
    %c0_11 = arith.constant 0 : index
    %24 = vector.load %arg5[%c0_9, %c0_10, %c0_11] : memref<4x2x128xf32, #tpu.memory_space<vmem>>, vector<4x2x128xf32>
    %25 = arith.mulf %17, %23 : vector<4x2x128xf32>
    %26 = arith.addf %24, %25 : vector<4x2x128xf32>
    %c0_12 = arith.constant 0 : index
    %c0_13 = arith.constant 0 : index
    %c0_14 = arith.constant 0 : index
    %27 = vector.load %arg5[%c0_12, %c0_13, %c0_14] : memref<4x2x128xf32, #tpu.memory_space<vmem>>, vector<4x2x128xf32>
    tpu.vector_store %arg5[%c0_12, %c0_13, %c0_14], %26 {strides = array<i32>} : memref<4x2x128xf32, #tpu.memory_space<vmem>>, vector<4x2x128xf32>,
    %c0_15 = arith.constant 0 : index
    %c0_16 = arith.constant 0 : index
    %c0_17 = arith.constant 0 : index
    %28 = vector.load %arg6[%c0_15, %c0_16, %c0_17] : memref<4x2x128xf32, #tpu.memory_space<vmem>>, vector<4x2x128xf32>
    %29 = arith.addf %28, %23 : vector<4x2x128xf32>
    %c0_18 = arith.constant 0 : index
    %c0_19 = arith.constant 0 : index
    %c0_20 = arith.constant 0 : index
    %30 = vector.load %arg6[%c0_18, %c0_19, %c0_20] : memref<4x2x128xf32, #tpu.memory_space<vmem>>, vector<4x2x128xf32>
    tpu.vector_store %arg6[%c0_18, %c0_19, %c0_20], %29 {strides = array<i32>} : memref<4x2x128xf32, #tpu.memory_space<vmem>>, vector<4x2x128xf32>,
    %c0_21 = arith.constant 0 : index
    %c0_22 = arith.constant 0 : index
    %c0_23 = arith.constant 0 : index
    %31 = vector.load %arg7[%c0_21, %c0_22, %c0_23] : memref<4x2x128xf32, #tpu.memory_space<vmem>>, vector<4x2x128xf32>
    %32 = arith.mulf %17, %17 : vector<4x2x128xf32>
    %33 = arith.addf %31, %32 : vector<4x2x128xf32>
    %c0_24 = arith.constant 0 : index
    %c0_25 = arith.constant 0 : index
    %c0_26 = arith.constant 0 : index
    %34 = vector.load %arg7[%c0_24, %c0_25, %c0_26] : memref<4x2x128xf32, #tpu.memory_space<vmem>>, vector<4x2x128xf32>
    tpu.vector_store %arg7[%c0_24, %c0_25, %c0_26], %33 {strides = array<i32>} : memref<4x2x128xf32, #tpu.memory_space<vmem>>, vector<4x2x128xf32>,
    %c0_i32_27 = arith.constant 0 : i32
    %35 = arith.cmpi eq, %arg1, %c0_i32_27 : i32
    %36 = arith.extui %35 : i1 to i32
    %c0_i32_28 = arith.constant 0 : i32
    %37 = arith.cmpi ne, %36, %c0_i32_28 : i32
    scf.if %37 {
      %c0_29 = arith.constant 0 : index
      %c0_30 = arith.constant 0 : index
      %c0_31 = arith.constant 0 : index
      %38 = vector.load %arg5[%c0_29, %c0_30, %c0_31] : memref<4x2x128xf32, #tpu.memory_space<vmem>>, vector<4x2x128xf32>
      %cst_32 = arith.constant dense<0.000000e+00> : vector<4x128xf32>
      %39 = vector.multi_reduction <add>, %38, %cst_32 [1] : vector<4x2x128xf32> to vector<4x128xf32>
      %cst_33 = arith.constant dense<0.000000e+00> : vector<4xf32>
      %40 = vector.multi_reduction <add>, %39, %cst_33 [1] : vector<4x128xf32> to vector<4xf32>
      %41 = vector.shape_cast %40 : vector<4xf32> to vector<4x1xf32>
      %c0_34 = arith.constant 0 : index
      %c0_35 = arith.constant 0 : index
      %c0_36 = arith.constant 0 : index
      %42 = vector.load %arg4[%c0_34, %c0_35, %c0_36] : memref<1x4x3xf32, #tpu.memory_space<vmem>>, vector<1x4x1xf32>
      %43 = vector.shape_cast %42 : vector<1x4x1xf32> to vector<4x1xf32>
      %44 = vector.shape_cast %41 : vector<4x1xf32> to vector<1x4x1xf32>
      tpu.vector_store %arg4[%c0_34, %c0_35, %c0_36], %44 {strides = array<i32>} : memref<1x4x3xf32, #tpu.memory_space<vmem>>, vector<1x4x1xf32>,
      %c0_37 = arith.constant 0 : index
      %c0_38 = arith.constant 0 : index
      %c0_39 = arith.constant 0 : index
      %45 = vector.load %arg6[%c0_37, %c0_38, %c0_39] : memref<4x2x128xf32, #tpu.memory_space<vmem>>, vector<4x2x128xf32>
      %cst_40 = arith.constant dense<0.000000e+00> : vector<4x128xf32>
      %46 = vector.multi_reduction <add>, %45, %cst_40 [1] : vector<4x2x128xf32> to vector<4x128xf32>
      %cst_41 = arith.constant dense<0.000000e+00> : vector<4xf32>
      %47 = vector.multi_reduction <add>, %46, %cst_41 [1] : vector<4x128xf32> to vector<4xf32>
      %48 = vector.shape_cast %47 : vector<4xf32> to vector<4x1xf32>
      %c0_42 = arith.constant 0 : index
      %c0_43 = arith.constant 0 : index
      %c1 = arith.constant 1 : index
      %49 = vector.load %arg4[%c0_42, %c0_43, %c1] : memref<1x4x3xf32, #tpu.memory_space<vmem>>, vector<1x4x1xf32>
      %50 = vector.shape_cast %49 : vector<1x4x1xf32> to vector<4x1xf32>
      %51 = vector.shape_cast %48 : vector<4x1xf32> to vector<1x4x1xf32>
      tpu.vector_store %arg4[%c0_42, %c0_43, %c1], %51 {strides = array<i32>} : memref<1x4x3xf32, #tpu.memory_space<vmem>>, vector<1x4x1xf32>,
      %c0_44 = arith.constant 0 : index
      %c0_45 = arith.constant 0 : index
      %c0_46 = arith.constant 0 : index
      %52 = vector.load %arg7[%c0_44, %c0_45, %c0_46] : memref<4x2x128xf32, #tpu.memory_space<vmem>>, vector<4x2x128xf32>
      %cst_47 = arith.constant dense<0.000000e+00> : vector<4x128xf32>
      %53 = vector.multi_reduction <add>, %52, %cst_47 [1] : vector<4x2x128xf32> to vector<4x128xf32>
      %cst_48 = arith.constant dense<0.000000e+00> : vector<4xf32>
      %54 = vector.multi_reduction <add>, %53, %cst_48 [1] : vector<4x128xf32> to vector<4xf32>
      %55 = vector.shape_cast %54 : vector<4xf32> to vector<4x1xf32>
      %c0_49 = arith.constant 0 : index
      %c0_50 = arith.constant 0 : index
      %c2 = arith.constant 2 : index
      %56 = vector.load %arg4[%c0_49, %c0_50, %c2] : memref<1x4x3xf32, #tpu.memory_space<vmem>>, vector<1x4x1xf32>
      %57 = vector.shape_cast %56 : vector<1x4x1xf32> to vector<4x1xf32>
      %58 = vector.shape_cast %55 : vector<4x1xf32> to vector<1x4x1xf32>
      tpu.vector_store %arg4[%c0_49, %c0_50, %c2], %58 {strides = array<i32>} : memref<1x4x3xf32, #tpu.memory_space<vmem>>, vector<1x4x1xf32>,
    } else {
    }
    return
  }
  func.func @transform_0(%arg0: i32, %arg1: i32) -> (i32, i32, i32, i32) {
    %c0_i32 = arith.constant 0 : i32
    %c0_i32_0 = arith.constant 0 : i32
    %c0_i32_1 = arith.constant 0 : i32
    return %arg0, %c0_i32, %arg1, %c0_i32_0 : i32, i32, i32, i32
  }
  func.func @transform_1(%arg0: i32, %arg1: i32) -> (i32, i32, i32) {
    %c0_i32 = arith.constant 0 : i32
    %c0_i32_0 = arith.constant 0 : i32
    return %arg0, %arg1, %c0_i32 : i32, i32, i32
  }
  func.func @transform_2(%arg0: i32, %arg1: i32) -> (i32, i32, i32) {
    %c0_i32 = arith.constant 0 : i32
    %c0_i32_0 = arith.constant 0 : i32
    %c0_i32_1 = arith.constant 0 : i32
    return %arg0, %c0_i32, %c0_i32_0 : i32, i32, i32
  }
}

</mosaic_0001>

<bundles_post_ra>
// kernel: tpu_custom_call.1
= control target key start
LH: loop header
LB: loop body
LE: loop exit
PB: predicated region body
PF: predicated region fallthrough
CT: control target
= control target key end

     0   :  { %7 = vsyncpa [#allocation6], 0  ;;  %s971_s0 = inlined_call_operand.hbm [shape: f32[2,4,2,128], index: 0, kind: input, shape index: {}]   ;;  %s972_s1 = inlined_call_operand.hbm [shape: s32[2,2,128], index: 1, kind: input, shape index: {}]   ;;  %s973_s2 = inlined_call_operand.vmem [shape: f32[2,4,3], index: 2, kind: output, shape index: {}]  }
   0x1   :  { %9 = vsyncpa [#allocation6 + $0x1], 0 }
   0x2   :  { %10 = vsyncpa [#allocation8], 0 }
   0x3   :  { %12 = vsyncpa [#allocation8 + $0x1], 0  ;;  %s812_s9 = smov 0   ;;  %s814_s10 = smov 0  }
   0x4   :  { %s816_s11 = smov 0   ;;  %s818_s12 = smov 0  }
   0x5   :  { %s820_s13 = smov 0   ;;  %s822_s14 = smov 0  }
   0x6 LB: > { %s585_s15 = sadd.s32 4294967295, %s792_s14   ;;  %s30_s16 = sadd.s32 1, %s788_s13  ;;  %s792_s14 = sphi %s822_s14, %s18_s14   ;;  %s788_s13 = sphi %s820_s13, %s981_s13   ;;  %s784_s12 = sphi %s818_s12, %s980_s12   ;;  %s780_s11 = sphi %s816_s11, %s979_s11   ;;  %s776_s10 = sphi %s814_s10, %s978_s10   ;;  %s772_s9 = sphi %s812_s9, %s977_s9  }
   0x7   : > { %p32_p0 = scmp.ge.s32.totalorder %s30_s16, 2  ;;  %s39_s17 = sadd.s32 1, %s780_s11 }
   0x8   : > { %p46_p1 = scmp.ne.s32.totalorder %s780_s11, %s776_s10  ;;  %p47_p2 = scmp.eq.s32.totalorder %s792_s14, 0 }
   0x9   : > { %s983_s16 = smov (%p32_p0, %s30_s16), 0  ;;  %p52_p4 = scmp.ne.s32.totalorder %s776_s10, %s772_s9 }
   0xa   : > { %p848_p3 = por %p47_p2, %p46_p1  ;;  %s34_s19 = ssub.s32 %s788_s13, %s983_s16 }
   0xb   : > { %p53_p5 = scmp.eq.s32.totalorder %s585_s15, 0  ;;  %p37_p6 = scmp.eq.s32.totalorder %s34_s19, 0 }
   0xc   : > { %p616_p8 = scmp.lt.s32.totalorder %s792_s14, 2  ;;  %s130_s22 = sand.u32 1, %s780_s11  }
   0xd   : > { %p855_p7 = por %p53_p5, %p52_p4  ;;  %s604_s23 = sshll.u32 %s788_s13, 3 }
   0xe   : > { %s861_s21 = scalar_select %p37_p6, %s780_s11, %s39_s17  }
   0xf   : > { %s589_s24 = sshll.u32 %s130_s22, 3  ;;  %s140_s27 = scalar_lea.hbm %s971_s0, %s604_s23 }
  0x10   : > { %s141_s28 = sshll.u32 %s140_s27, 4  ;;  %s134_s29 = scalar_lea.vmem [#allocation5], %s589_s24  ;;  %s142_s28 = int_to_ptr.hbm [resolvable:$true] %s141_s28 }
  0x11   : > { %s143_s30 = sshll.u32 %s134_s29, 4  ;;  %p870_p9 = pnand %p616_p8, %p848_p3  ;;  %s144_s30 = int_to_ptr.vmem [resolvable:$true] %s143_s30 }
  0x12   : > { %p594_p10 = scmp.ge.s32.totalorder %s792_s14, 1  ;;  %p171_p11 = scmp.lt.s32.totalorder %s792_s14, 3 }
  0x13   : > { %s131_s4 = scalar_lea.sflag [#allocation6], %s130_s22  ;;  %s794_s5 = smov 32  }
  0x14   : > { %s795_s6 = smov 2   ;;  %p172_p12 = pnand %p594_p10, %p171_p11 }
  0x15   : > { %612 = dma.hbm_to_vmem [thread:$0]  (!%p870_p9), %s142_s28, 128, %s144_s30, %s131_s4, %s794_s5, %s794_s5, %s795_s6  }
  0x16   : > { %s592_s7 = sshll.u32 %s130_s22, 1  ;;  %s593_s8 = sshll.u32 %s788_s13, 1 }
  0x17   : > { %s162_s17 = scalar_lea.hbm %s972_s1, %s593_s8  ;;  %s157_s19 = scalar_lea.vmem [#allocation7], %s592_s7 }
  0x18   : > { %s164_s18 = sshll.u32 %s162_s17, 4  ;;  %s166_s23 = sshll.u32 %s157_s19, 4  ;;  %s165_s18 = int_to_ptr.hbm [resolvable:$true] %s164_s18  ;;  %s167_s23 = int_to_ptr.vmem [resolvable:$true] %s166_s23 }
  0x19   : > { %s154_s24 = scalar_lea.sflag [#allocation8], %s130_s22  ;;  %175 = sbr.rel (%p172_p12) target bundleno = 236 (0xec), region = 28 }
  0x1a   : > { %615 = dma.hbm_to_vmem [thread:$0]  (!%p870_p9), %s165_s18, 32, %s167_s23, %s154_s24  }
  0x1b   : > { %s177_s25 = sand.u32 (!%p172_p12), 1, %s776_s10  }
  0x1c   : > { %s595_s26 = sshll.u32 (!%p172_p12), %s177_s25, 3  ;;  %s178_s27 = scalar_lea.sflag (!%p172_p12), [#allocation6], %s177_s25 }
  0x1d   : > { %s181_s28 = scalar_lea.vmem (!%p172_p12), [#allocation5], %s595_s26 }
  0x1e   : > { %763 = dma.done.wait (%p855_p7), %s178_s27, 128  }
  0x1f   : > { %765 = vsyncadd (%p855_p7), %s178_s27, 4294967168  ;;  %s596_s29 = sshll.u32 %s177_s25, 1  ;;  %s188_s30 = scalar_lea.sflag [#allocation8], %s177_s25 }
  0x20   : > { %s889_s4 = scalar_lea.vmem [#allocation7], %s596_s29 }
  0x21   : > { %767 = dma.done.wait (%p855_p7), %s188_s30, 32  }
  0x22   : > { %769 = vsyncadd (%p855_p7), %s188_s30, 4294967264  ;;  %v796_v0 = vmov 0.0   ;;  %vm242_vm0 = vcmask 1041408   ;;  %v237_v1 = vld [vmem:[%s181_s28] sm:$0x3]  ;;  %vm383_vm9 = vcmask 1041409  }
  0x23   : > { %225 = vst [vmem:[#allocation2] sm:$0x3] %v796_v0  ;;  %v238_v2 = vld [vmem:[%s181_s28 + $0x2] sm:$0x3]  ;;  %v239_v3 = vld [vmem:[%s181_s28 + $0x4] sm:$0x3] }
  0x24   : > { %226 = vst [vmem:[#allocation2 + $0x2] sm:$0x3] %v796_v0  ;;  %v240_v4 = vld [vmem:[%s181_s28 + $0x6] sm:$0x3]  ;;  %v243_v5 = vsel %vm242_vm0, %v237_v1, -inf  ;;  %v244_v6 = vsel %vm242_vm0, %v238_v2, -inf }
  0x25   : > { %227 = vst [vmem:[#allocation2 + $0x4] sm:$0x3] %v796_v0  ;;  %v245_v7 = vsel %vm242_vm0, %v239_v3, -inf  ;;  %v246_v8 = vsel %vm242_vm0, %v240_v4, -inf  ;;  %v247_v9 = vmax.f32 %v243_v5, %v244_v6  ;;  %v241_v21 = vld [vmem:[%s889_s4] sm:$0x3] }
  0x26   : > { %228 = vst [vmem:[#allocation2 + $0x6] sm:$0x3] %v796_v0  ;;  %v248_v10 = vmax.f32 %v245_v7, %v246_v8  ;;  %vm288_vm1 = vcmp.eq.s32.totalorder %v241_v21, 0  ;;  %vm289_vm2 = vcmp.eq.s32.totalorder %v241_v21, 1  ;;  %vm290_vm3 = vcmp.eq.s32.totalorder %v241_v21, 2  ;;  %p217_p13 = scmp.lt.s32.totalorder %s784_s12, 1 }
  0x27   : > { %229 = vst [vmem:[#allocation3] sm:$0x3] %v796_v0  ;;  %vm291_vm4 = vcmp.eq.s32.totalorder %v241_v21, 3  ;;  %v598_v31 = vsel %vm288_vm1, 1.0, %v796_v0  ;;  %v599_v32 = vsel %vm289_vm2, 1.0, %v796_v0  ;;  %v600_v36 = vsel %vm290_vm3, 1.0, %v796_v0 }
  0x28   : > { %230 = vst [vmem:[#allocation3 + $0x2] sm:$0x3] %v796_v0  ;;  %v249_v11 = vmax.f32 %v247_v9, %v248_v10  ;;  %v601_v42 = vsel %vm291_vm4, 1.0, %v796_v0  ;;  %vm385_vm10 = vcmask 1042434   ;;  %vm387_vm11 = vcmask 1043459   ;;  %s985_s12 = smov (!%p217_p13, %s784_s12), 1 }
  0x29   : > { %231 = vst [vmem:[#allocation3 + $0x4] sm:$0x3] %v796_v0  ;;  %vm390_vm12 = vcmask 1043456   ;;  %s597_s20 = sshll.u32 %s985_s12, 2  ;;  %vm394_vm13 = vcmask 3072   ;;  %vm439_vm14 = vcmask 11272  }
  0x2a   : > { %232 = vst [vmem:[#allocation3 + $0x6] sm:$0x3] %v796_v0  ;;  %v250_v12 = vsub.f32 %v237_v1, %v249_v11  ;;  %v251_v13 = vsub.f32 %v238_v2, %v249_v11  ;;  %v252_v14 = vsub.f32 %v239_v3, %v249_v11  ;;  %v253_v15 = vsub.f32 %v240_v4, %v249_v11  ;;  %v300_v7 = vld [vmem:[#allocation2] sm:$0x3]  ;;  %s220_s5 = scalar_lea.vmem %s973_s2, %s597_s20 }
  0x2b   : > { %233 = vst [vmem:[#allocation4] sm:$0x3] %v796_v0  ;;  %v301_v8 = vld [vmem:[#allocation2 + $0x2] sm:$0x3]  ;;  %vm484_vm15 = vcmask 19472  }
  0x2c   : > { %234 = vst [vmem:[#allocation4 + $0x2] sm:$0x3] %v796_v0  ;;  %v254_v16 = vmul.f32 1.442695, %v250_v12  ;;  %v256_v17 = vmul.f32 1.442695, %v251_v13 }
  0x2d   : > { %235 = vst [vmem:[#allocation4 + $0x4] sm:$0x3] %v796_v0  ;;  %v258_v18 = vmul.f32 1.442695, %v252_v14  ;;  %v260_v19 = vmul.f32 1.442695, %v253_v15 }
  0x2e   : > { %236 = vst [vmem:[#allocation4 + $0x6] sm:$0x3] %v796_v0  ;;  %668 = vpow2.f32 %v254_v16  ;;  %v316_v33 = vld [vmem:[#allocation3] sm:$0x3]  ;;  %v302_v9 = vld [vmem:[#allocation2 + $0x4] sm:$0x3] }
  0x2f   : > { %670 = vpow2.f32 %v256_v17  ;;  %v317_v34 = vld [vmem:[#allocation3 + $0x2] sm:$0x3]  ;;  %v320_v38 = vadd.f32 %v598_v31, %v316_v33  ;;  %v303_v12 = vld [vmem:[#allocation2 + $0x6] sm:$0x3] }
  0x30   : > { %672 = vpow2.f32 %v258_v18  ;;  %v318_v37 = vld [vmem:[#allocation3 + $0x4] sm:$0x3]  ;;  %v321_v39 = vadd.f32 %v599_v32, %v317_v34 }
  0x31   : > { %674 = vpow2.f32 %v260_v19  ;;  %v319_v40 = vld [vmem:[#allocation3 + $0x6] sm:$0x3]  ;;  %v322_v41 = vadd.f32 %v600_v36, %v318_v37  ;;  %324 = vst [vmem:[#allocation3] sm:$0x3] %v320_v38 }
  0x32   : > { %v323_v43 = vadd.f32 %v601_v42, %v319_v40  ;;  %325 = vst [vmem:[#allocation3 + $0x2] sm:$0x3] %v321_v39 }
  0x33   : > { %326 = vst [vmem:[#allocation3 + $0x4] sm:$0x3] %v322_v41 }
  0x34   : > { %v669_v20 = vpop.eup %668  ;;  %327 = vst [vmem:[#allocation3 + $0x6] sm:$0x3] %v323_v43 }
  0x35   : > { %v671_v22 = vpop.eup %670  ;;  %v262_v23 = vsel %vm242_vm0, %v669_v20, 0.0 }
  0x36   : > { %v673_v24 = vpop.eup %672  ;;  %v263_v25 = vsel %vm242_vm0, %v671_v22, 0.0 }
  0x37   : > { %v675_v26 = vpop.eup %674  ;;  %v264_v27 = vadd.f32 %v263_v25, %v262_v23  ;;  %v265_v28 = vsel %vm242_vm0, %v673_v24, 0.0  ;;  %v328_v25 = vld [vmem:[#allocation4] sm:$0x3] }
  0x38   : > { %v267_v29 = vsel %vm242_vm0, %v675_v26, 0.0  ;;  %v396_v46 = vld [vmem:[#allocation3] sm:$0x3] }
  0x39   : > { %v266_v30 = vadd.f32 %v265_v28, %v264_v27  ;;  %v397_v49 = vld [vmem:[#allocation3 + $0x2] sm:$0x3]  ;;  %v400_v52 = vsel %vm242_vm0, %v396_v46, 0.0 }
  0x3a   : > { %v398_v51 = vld [vmem:[#allocation3 + $0x4] sm:$0x3]  ;;  %v407_v53 = vsel %vm242_vm0, %v397_v49, 0.0  ;;  %v401_v58 = vrot.slane %v400_v52, 4 }
  0x3b   : > { %v268_v35 = vadd.f32 %v267_v29, %v266_v30  ;;  %v414_v55 = vsel %vm242_vm0, %v398_v51, 0.0  ;;  %v399_v57 = vld [vmem:[#allocation3 + $0x6] sm:$0x3]  ;;  %v408_v59 = vrot.slane %v407_v53, 4  ;;  %v331_v29 = vld [vmem:[#allocation4 + $0x6] sm:$0x3] }
  0x3c   : > { %v415_v61 = vrot.slane %v414_v55, 4  ;;  %v421_v63 = vsel %vm242_vm0, %v399_v57, 0.0  ;;  %v402_v1 = vadd.f32 %v401_v58, %v400_v52 }
  0x3d   : > { %676 = vrcp.f32 %v268_v35  ;;  %vm274_vm5 = vweird.f32 %v268_v35  ;;  %v278_v47 = vand.u32 2147483647, %v268_v35  ;;  %v280_v48 = vand.u32 2147483648, %v268_v35 }
  0x3e   : > { %v409_v2 = vadd.f32 %v408_v59, %v407_v53  ;;  %v416_v10 = vadd.f32 %v415_v61, %v414_v55  ;;  %v422_v11 = vrot.slane %v421_v63, 4  ;;  %v403_v17 = vrot.slane %v402_v1, 2 }
  0x3f   : > { %v281_v56 = vor.u32 1.1754944e-38, %v280_v48  ;;  %vm279_vm8 = vcmp.eq.f32.partialorder %v278_v47, 8.507059e+37 }
  0x40   : > { %v410_v23 = vrot.slane %v409_v2, 2  ;;  %v417_v28 = vrot.slane %v416_v10, 2  ;;  %v404_v34 = vadd.f32 %v403_v17, %v402_v1 }
  0x42   : > { %v418_v40 = vadd.f32 %v417_v28, %v416_v10  ;;  %v405_v41 = vrot.slane %v404_v34, 1 }
  0x43   : > { %v677_v44 = vpop.eup %676 }
  0x44   : > { %v270_v45 = vmul.f32 %v677_v44, %v268_v35  ;;  %vm275_vm6 = vweird.f32 %v677_v44  ;;  %v411_v35 = vadd.f32 %v410_v23, %v409_v2  ;;  %v419_v47 = vrot.slane %v418_v40, 1 }
  0x45   : > { %vm276_vm7 = vmor %vm274_vm5, %vm275_vm6 }
  0x46   : > { %v271_v50 = vsub.f32 1.0, %v270_v45 }
  0x48   : > { %v272_v54 = vmul.f32 %v677_v44, %v271_v50 }
  0x4a   : > { %v273_v60 = vadd.f32 %v677_v44, %v272_v54  ;;  %v406_v54 = vadd.f32 %v405_v41, %v404_v34 }
  0x4c   : > { %v277_v62 = vsel %vm276_vm7, %v677_v44, %v273_v60 }
  0x4d   : > { %v282_v0 = vsel %vm279_vm8, %v281_v56, %v277_v62 }
  0x4e   : > { %v284_v3 = vmul.f32 %v669_v20, %v282_v0  ;;  %v285_v4 = vmul.f32 %v671_v22, %v282_v0  ;;  %v286_v5 = vmul.f32 %v673_v24, %v282_v0  ;;  %v287_v6 = vmul.f32 %v675_v26, %v282_v0  ;;  %v329_v24 = vld [vmem:[#allocation4 + $0x2] sm:$0x3]  ;;  %v330_v26 = vld [vmem:[#allocation4 + $0x4] sm:$0x3] }
  0x4f   : > { %v423_v22 = vadd.f32 %v422_v11, %v421_v63  ;;  %v420_v63 = vadd.f32 %v419_v47, %v418_v40 }
  0x50   : > { %v304_v13 = vmul.f32 %v598_v31, %v284_v3  ;;  %v305_v14 = vmul.f32 %v599_v32, %v285_v4  ;;  %v306_v15 = vmul.f32 %v600_v36, %v286_v5  ;;  %v307_v16 = vmul.f32 %v601_v42, %v287_v6 }
  0x51   : > { %v332_v27 = vmul.f32 %v284_v3, %v284_v3  ;;  %v333_v30 = vmul.f32 %v285_v4, %v285_v4  ;;  %v334_v33 = vmul.f32 %v286_v5, %v286_v5  ;;  %v335_v31 = vmul.f32 %v287_v6, %v287_v6 }
  0x52   : > { %v308_v18 = vadd.f32 %v304_v13, %v300_v7  ;;  %v309_v19 = vadd.f32 %v305_v14, %v301_v8  ;;  %v310_v21 = vadd.f32 %v306_v15, %v302_v9  ;;  %v311_v20 = vadd.f32 %v307_v16, %v303_v12 }
  0x53   : > { %v336_v32 = vadd.f32 %v332_v27, %v328_v25  ;;  %v337_v36 = vadd.f32 %v333_v30, %v329_v24  ;;  %v338_v37 = vadd.f32 %v334_v33, %v330_v26  ;;  %v424_v38 = vrot.slane %v423_v22, 2 }
  0x54   : > { %312 = vst [vmem:[#allocation2] sm:$0x3] %v308_v18  ;;  %v339_v39 = vadd.f32 %v335_v31, %v331_v29  ;;  %v412_v42 = vrot.slane %v411_v35, 1 }
  0x55   : > { %313 = vst [vmem:[#allocation2 + $0x2] sm:$0x3] %v309_v19  ;;  %v924_v44 = vadd.f32 %v424_v38, %v423_v22 }
  0x56   : > { %314 = vst [vmem:[#allocation2 + $0x4] sm:$0x3] %v310_v21  ;;  %v413_v55 = vadd.f32 %v412_v42, %v411_v35 }
  0x57   : > { %315 = vst [vmem:[#allocation2 + $0x6] sm:$0x3] %v311_v20  ;;  %v426_v59 = vrot.slane %v924_v44, 1 }
  0x58   : > { %340 = vst [vmem:[#allocation4] sm:$0x3] %v336_v32 }
  0x59   : > { %341 = vst [vmem:[#allocation4 + $0x2] sm:$0x3] %v337_v36 }
  0x5a   : > { %342 = vst [vmem:[#allocation4 + $0x4] sm:$0x3] %v338_v37  ;;  %v432_v37 = vsel %vm383_vm9, %v413_v55, %v406_v54 }
  0x5b   : > { %v347_v43 = vld [vmem:[#allocation2] sm:$0x3]  ;;  %343 = vst [vmem:[#allocation4 + $0x6] sm:$0x3] %v339_v39 }
  0x5c   : > { %v348_v45 = vld [vmem:[#allocation2 + $0x2] sm:$0x3]  ;;  %v351_v46 = vsel %vm242_vm0, %v347_v43, 0.0 }
  0x5d   : > { %v349_v48 = vld [vmem:[#allocation2 + $0x4] sm:$0x3]  ;;  %v352_v49 = vrot.slane %v351_v46, 4  ;;  %v358_v50 = vsel %vm242_vm0, %v348_v45, 0.0 }
  0x5e   : > { %v350_v51 = vld [vmem:[#allocation2 + $0x6] sm:$0x3]  ;;  %v359_v52 = vrot.slane %v358_v50, 4  ;;  %v365_v53 = vsel %vm242_vm0, %v349_v48, 0.0 }
  0x5f   : > { %v353_v56 = vadd.f32 %v352_v49, %v351_v46  ;;  %v366_v57 = vrot.slane %v365_v53, 4  ;;  %v372_v58 = vsel %vm242_vm0, %v350_v51, 0.0  ;;  %v441_v60 = vld [vmem:[#allocation4] sm:$0x3]  ;;  %v427_v49 = vadd.f32 %v426_v59, %v924_v44 }
  0x60   : > { %v360_v61 = vadd.f32 %v359_v52, %v358_v50  ;;  %v373_v62 = vrot.slane %v372_v58, 4  ;;  %v442_v0 = vld [vmem:[#allocation4 + $0x2] sm:$0x3]  ;;  %v445_v1 = vsel %vm242_vm0, %v441_v60, 0.0 }
  0x61   : > { %v354_v2 = vrot.slane %v353_v56, 2  ;;  %v367_v3 = vadd.f32 %v366_v57, %v365_v53  ;;  %v443_v4 = vld [vmem:[#allocation4 + $0x4] sm:$0x3]  ;;  %v446_v5 = vrot.slane %v445_v1, 4  ;;  %v452_v6 = vsel %vm242_vm0, %v442_v0, 0.0 }
  0x62   : > { %v361_v7 = vrot.slane %v360_v61, 2  ;;  %v374_v8 = vadd.f32 %v373_v62, %v372_v58  ;;  %v444_v9 = vld [vmem:[#allocation4 + $0x6] sm:$0x3]  ;;  %v453_v10 = vrot.slane %v452_v6, 4  ;;  %v459_v11 = vsel %vm242_vm0, %v443_v4, 0.0 }
  0x63   : > { %v355_v12 = vadd.f32 %v354_v2, %v353_v56  ;;  %v368_v13 = vrot.slane %v367_v3, 2  ;;  %v447_v14 = vadd.f32 %v446_v5, %v445_v1  ;;  %v460_v15 = vrot.slane %v459_v11, 4 }
  0x64   : > { %v362_v16 = vadd.f32 %v361_v7, %v360_v61  ;;  %v375_v17 = vrot.slane %v374_v8, 2  ;;  %v454_v18 = vadd.f32 %v453_v10, %v452_v6  ;;  %v466_v19 = vsel %vm242_vm0, %v444_v9, 0.0 }
  0x65   : > { %v356_v21 = vrot.slane %v355_v12, 1  ;;  %v369_v23 = vadd.f32 %v368_v13, %v367_v3  ;;  %v448_v25 = vrot.slane %v447_v14, 2  ;;  %v461_v20 = vadd.f32 %v460_v15, %v459_v11 }
  0x66   : > { %v363_v22 = vrot.slane %v362_v16, 1  ;;  %v376_v24 = vadd.f32 %v375_v17, %v374_v8  ;;  %v455_v26 = vrot.slane %v454_v18, 2  ;;  %v467_v27 = vrot.slane %v466_v19, 4 }
  0x67   : > { %v357_v28 = vadd.f32 %v356_v21, %v355_v12  ;;  %v370_v29 = vrot.slane %v369_v23, 1  ;;  %v449_v30 = vadd.f32 %v448_v25, %v447_v14  ;;  %v462_v33 = vrot.slane %v461_v20, 2 }
  0x68   : > { %v364_v31 = vadd.f32 %v363_v22, %v362_v16  ;;  %v377_v32 = vrot.slane %v376_v24, 1  ;;  %v456_v34 = vadd.f32 %v455_v26, %v454_v18  ;;  %v468_v35 = vadd.f32 %v467_v27, %v466_v19 }
  0x69   : > { %v371_v36 = vadd.f32 %v370_v29, %v369_v23  ;;  %v450_v38 = vrot.slane %v449_v30, 1  ;;  %v463_v39 = vadd.f32 %v462_v33, %v461_v20  ;;  %v433_v53 = vsel %vm385_vm10, %v420_v63, %v432_v37 }
  0x6a   : > { %v378_v40 = vadd.f32 %v377_v32, %v376_v24  ;;  %v384_v41 = vsel %vm383_vm9, %v364_v31, %v357_v28  ;;  %v457_v42 = vrot.slane %v456_v34, 1  ;;  %v469_v43 = vrot.slane %v468_v35, 2 }
  0x6b   : > { %v386_v45 = vsel %vm385_vm10, %v371_v36, %v384_v41  ;;  %v451_v46 = vadd.f32 %v450_v38, %v449_v30  ;;  %v464_v47 = vrot.slane %v463_v39, 1  ;;  %v434_v58 = vsel %vm387_vm11, %v427_v49, %v433_v53 }
  0x6c   : > { %v388_v48 = vsel %vm387_vm11, %v378_v40, %v386_v45  ;;  %v458_v50 = vadd.f32 %v457_v42, %v456_v34  ;;  %v470_v51 = vadd.f32 %v469_v43, %v468_v35  ;;  %v436_v59 = vsel %vm390_vm12, %v434_v58, 0.0 }
  0x6d   : > { %v391_v52 = vsel %vm390_vm12, %v388_v48, 0.0  ;;  %v465_v54 = vadd.f32 %v464_v47, %v463_v39 }
  0x6e   : > { %392 = vadd.xlane.f32.xlu0 %v391_v52  ;;  %v471_v55 = vrot.slane %v470_v51, 1  ;;  %v477_v56 = vsel %vm383_vm9, %v458_v50, %v451_v46 }
  0x6f   : > { %v478_v57 = vsel %vm385_vm10, %v465_v54, %v477_v56 }
  0x70   : > { %v472_v60 = vadd.f32 %v471_v55, %v470_v51 }
  0x72   : > { %v479_v44 = vsel %vm387_vm11, %v472_v60, %v478_v57 }
  0x73   : > { %v481_v61 = vsel %vm390_vm12, %v479_v44, 0.0 }
  0x74   : > { %482 = vadd.xlane.f32.xlu1 %v481_v61 }
  0x76   : > { %437 = vadd.xlane.f32.xlu0 %v436_v59 }
  0xe1   : > { %v393_v62 = vpop.xlane.xlu0 %392 }
  0xe2   : > { %395 = vst.msk [vmem:[%s220_s5] sm:$0xf] %vm394_vm13, %v393_v62 }
  0xe7   : > { %v483_v63 = vpop.xlane.xlu1 %482 }
  0xe9   : > { %v438_v0 = vpop.xlane.xlu0 %437 }
  0xea   : > { %440 = vst.msk [vmem:[%s220_s5] sm:$0xf] %vm439_vm14, %v438_v0 }
  0xeb   : > { %485 = vst.msk [vmem:[%s220_s5] sm:$0xf] %vm484_vm15, %v483_v63 }
  0xec PF: > { %s18_s14 = sadd.s32 1, %s792_s14   ;;  %s977_s9 = smov %s776_s10 }
  0xed   : > { %p15_p0 = scmp.ge.s32.totalorder %s18_s14, 4   ;;  %s978_s10 = smov %s780_s11 }
  0xee   : > { %s979_s11 = smov %s861_s21  ;;  %s980_s12 = smov %s788_s13 }
  0xef   : > { %s981_s13 = smov %s983_s16  ;;  %17 = sbr.rel (!%p15_p0) target bundleno = 6 (0x6), region = 89 }
  0xf4   :  { %505 = vsyncpa [#allocation6], 1 }
  0xf5   :  { %507 = vsyncpa [#allocation6 + $0x1], 1 }
  0xf6   :  { %508 = vsyncpa [#allocation8], 1 }
  0xf7   :  { %510 = vsyncpa [#allocation8 + $0x1], 1 }

</bundles_post_ra>
